<compile_context>
chip_gen: v7x
topology: tpu7x:2x2x1
jax: 0.10.0
libtpu: 0.0.40
codegen_flags: <defaults>
</compile_context>

<pallas_src>
import functools

import jax
import jax.numpy as jnp
from jax import lax
from jax.experimental import pallas as pl
from jax.experimental.pallas import tpu as pltpu


# ----------------------------- helpers -------------------------------------


def _round_up(n: int, m: int) -> int:
    return ((n + m - 1) // m) * m


def _pad_axis(a, axis: int, size: int):
    pad = size - a.shape[axis]
    if pad == 0:
        return a
    widths = [(0, 0)] * a.ndim
    widths[axis] = (0, pad)
    return jnp.pad(a, widths)


def _choose_tm(rows: int, cin: int, cout: int, x_itemsize: int, w_itemsize: int,
               out_itemsize: int, tm_max: int = 512,
               budget_bytes: int = 12 * 1024 * 1024) -> int:
    """Row-tile size so (resident weight + double-buffered x/out blocks) stays
    under a conservative scoped-VMEM budget (safe for v5e 16 MiB default and
    v7x's 64 MiB physical VMEM)."""
    resident = cin * cout * w_itemsize
    tm = tm_max
    while tm > 8 and resident + 2 * tm * (cin * x_itemsize + cout * out_itemsize) > budget_bytes:
        tm //= 2
    tm = max(8, min(tm, _round_up(rows, 8)))
    return _round_up(tm, 8)


# -------------------- fused QKV projection (3 outputs) ----------------------


def _qkv_kernel(x_ref, w_ref, b_ref, q_ref, k_ref, v_ref, *, cp, compute_dtype):
    # x_ref: [TM, Cin_p]   w_ref: [Cin_p, 3*cp]   b_ref: [1, 3*cp]
    x = x_ref[...].astype(compute_dtype)
    w = w_ref[...].astype(compute_dtype)
    acc = jnp.dot(x, w, preferred_element_type=jnp.float32)       # f32 acc
    acc = acc + b_ref[...].astype(jnp.float32)
    # Static, 128-aligned lane slices of the accumulator -> 3 lane-dense stores.
    q_ref[...] = acc[:, 0 * cp:1 * cp].astype(q_ref.dtype)
    k_ref[...] = acc[:, 1 * cp:2 * cp].astype(k_ref.dtype)
    v_ref[...] = acc[:, 2 * cp:3 * cp].astype(v_ref.dtype)


def _qkv_proj(x2d, weights, biases, *, compute_dtype, out_dtype, tm_max=512):
    """x2d: [rows, Cin]; weights: 3 torch-layout [Cout, Cin]; biases: 3 [Cout].
    Returns (q, k, v), each [rows, Cout] in out_dtype."""
    rows, cin = x2d.shape
    cout = weights[0].shape[0]
    cin_p = _round_up(cin, 128)
    cp = _round_up(cout, 128)

    w_dtype = compute_dtype if compute_dtype != jnp.float32 else weights[0].dtype
    w_p = jnp.zeros((cin_p, 3 * cp), w_dtype)
    b_p = jnp.zeros((1, 3 * cp), jnp.float32)
    for j, (w, b) in enumerate(zip(weights, biases)):
        w_p = w_p.at[:cin, j * cp:j * cp + cout].set(w.T.astype(w_dtype))
        b_p = b_p.at[0, j * cp:j * cp + cout].set(b.astype(jnp.float32))

    x_p = _pad_axis(x2d, 1, cin_p)
    tm = _choose_tm(rows, cin_p, 3 * cp,
                    jnp.dtype(x2d.dtype).itemsize,
                    jnp.dtype(w_dtype).itemsize,
                    jnp.dtype(out_dtype).itemsize, tm_max)
    rows_p = _round_up(rows, tm)
    x_p = _pad_axis(x_p, 0, rows_p)

    cost = pl.CostEstimate(
        flops=2 * rows_p * cin_p * 3 * cp,
        transcendentals=0,
        bytes_accessed=(rows_p * cin_p * jnp.dtype(x_p.dtype).itemsize
                        + cin_p * 3 * cp * jnp.dtype(w_dtype).itemsize
                        + 3 * rows_p * cp * jnp.dtype(out_dtype).itemsize),
    )

    out_struct = jax.ShapeDtypeStruct((rows_p, cp), out_dtype)
    q_p, k_p, v_p = pl.pallas_call(
        functools.partial(_qkv_kernel, cp=cp, compute_dtype=compute_dtype),
        out_shape=(out_struct, out_struct, out_struct),
        grid_spec=pltpu.PrefetchScalarGridSpec(
            num_scalar_prefetch=0,
            grid=(rows_p // tm,),
            in_specs=[
                pl.BlockSpec((tm, cin_p), lambda i: (i, 0)),
                pl.BlockSpec((cin_p, 3 * cp), lambda i: (0, 0)),   # resident
                pl.BlockSpec((1, 3 * cp), lambda i: (0, 0)),       # resident
            ],
            out_specs=[
                pl.BlockSpec((tm, cp), lambda i: (i, 0)),
                pl.BlockSpec((tm, cp), lambda i: (i, 0)),
                pl.BlockSpec((tm, cp), lambda i: (i, 0)),
            ],
        ),
        compiler_params=pltpu.CompilerParams(dimension_semantics=("parallel",)),
        cost_estimate=cost,
    )(x_p, w_p, b_p)

    return (q_p[:rows, :cout], k_p[:rows, :cout], v_p[:rows, :cout])


# ----------------------- row-tiled linear (matmul + bias) -------------------


def _linear_kernel(x_ref, w_ref, b_ref, o_ref, *, compute_dtype):
    x = x_ref[...].astype(compute_dtype)
    w = w_ref[...].astype(compute_dtype)
    acc = jnp.dot(x, w, preferred_element_type=jnp.float32)       # f32 acc
    acc = acc + b_ref[...].astype(jnp.float32)
    o_ref[...] = acc.astype(o_ref.dtype)


def _linear(x2d, w, bias, *, compute_dtype, out_dtype, tm_max=512):
    """x2d: [rows, Cin]; w: torch-layout [Cout, Cin]; bias: [Cout]."""
    rows, cin = x2d.shape
    cout = w.shape[0]
    cin_p = _round_up(cin, 128)
    cout_p = _round_up(cout, 128)

    w_dtype = compute_dtype if compute_dtype != jnp.float32 else w.dtype
    w_p = jnp.zeros((cin_p, cout_p), w_dtype).at[:cin, :cout].set(w.T.astype(w_dtype))
    b_p = jnp.zeros((1, cout_p), jnp.float32).at[0, :cout].set(bias.astype(jnp.float32))
    x_p = _pad_axis(x2d, 1, cin_p)

    tm = _choose_tm(rows, cin_p, cout_p,
                    jnp.dtype(x2d.dtype).itemsize,
                    jnp.dtype(w_dtype).itemsize,
                    jnp.dtype(out_dtype).itemsize, tm_max)
    rows_p = _round_up(rows, tm)
    x_p = _pad_axis(x_p, 0, rows_p)

    cost = pl.CostEstimate(
        flops=2 * rows_p * cin_p * cout_p,
        transcendentals=0,
        bytes_accessed=(rows_p * cin_p * jnp.dtype(x_p.dtype).itemsize
                        + cin_p * cout_p * jnp.dtype(w_dtype).itemsize
                        + rows_p * cout_p * jnp.dtype(out_dtype).itemsize),
    )

    out = pl.pallas_call(
        functools.partial(_linear_kernel, compute_dtype=compute_dtype),
        out_shape=jax.ShapeDtypeStruct((rows_p, cout_p), out_dtype),
        grid_spec=pltpu.PrefetchScalarGridSpec(
            num_scalar_prefetch=0,
            grid=(rows_p // tm,),
            in_specs=[
                pl.BlockSpec((tm, cin_p), lambda i: (i, 0)),
                pl.BlockSpec((cin_p, cout_p), lambda i: (0, 0)),   # resident
                pl.BlockSpec((1, cout_p), lambda i: (0, 0)),       # resident
            ],
            out_specs=pl.BlockSpec((tm, cout_p), lambda i: (i, 0)),
        ),
        compiler_params=pltpu.CompilerParams(dimension_semantics=("parallel",)),
        cost_estimate=cost,
    )(x_p, w_p, b_p)

    return out[:rows, :cout]


# ----------------------------- attention core -------------------------------


def _attn_body(q_ref, k_ref, v_ref, o_ref, mask_f32, *, scale, compute_dtype):
    # q_ref/k_ref/v_ref/o_ref blocks squeeze to [L, D]; one (batch, head) pair.
    q = (q_ref[...] * scale).astype(compute_dtype)    # fold scaling into q (L*D muls)
    k = k_ref[...].astype(compute_dtype)
    v = v_ref[...].astype(compute_dtype)

    s = lax.dot_general(q, k, (((1,), (1,)), ((), ())),
                        preferred_element_type=jnp.float32)        # (L, L)
    if mask_f32 is not None:
        s = s + mask_f32                                           # (L, L)
    s = s - jnp.max(s, axis=-1, keepdims=True)
    p = jnp.exp(s)
    p = p / jnp.sum(p, axis=-1, keepdims=True)
    # TODO(synk): training-mode dropout on p goes here (eval-mode identity).
    out = jnp.dot(p.astype(compute_dtype), v,
                  preferred_element_type=jnp.float32)              # (L, D)
    o_ref[...] = out.astype(o_ref.dtype)


def _attn_kernel(q_ref, k_ref, v_ref, o_ref, *, scale, compute_dtype):
    _attn_body(q_ref, k_ref, v_ref, o_ref, None,
               scale=scale, compute_dtype=compute_dtype)


def _attn_kernel_masked(q_ref, k_ref, v_ref, m_ref, o_ref, *, scale, compute_dtype):
    _attn_body(q_ref, k_ref, v_ref, o_ref, m_ref[...].astype(jnp.float32),
               scale=scale, compute_dtype=compute_dtype)


def _attention_core(q, k, v, scale, attention_mask=None, *, compute_dtype):
    """q, k, v: [B, H, L, D] -> [B, H, L, D]."""
    B, H, L, D = q.shape
    blk = pl.BlockSpec((None, None, L, D), lambda b, h: (b, h, 0, 0))

    in_specs = [blk, blk, blk]
    args = [q, k, v]
    mask_bytes = 0
    if attention_mask is not None:
        # Constant block index across the head axis -> mask is DMA'd once per batch.
        in_specs.append(pl.BlockSpec((None, None, L, L), lambda b, h: (b, 0, 0, 0)))
        args.append(attention_mask)
        kernel = functools.partial(_attn_kernel_masked, scale=scale,
                                   compute_dtype=compute_dtype)
        mask_bytes = attention_mask.size * jnp.dtype(attention_mask.dtype).itemsize
    else:
        kernel = functools.partial(_attn_kernel, scale=scale,
                                   compute_dtype=compute_dtype)

    itemsize = jnp.dtype(q.dtype).itemsize
    cost = pl.CostEstimate(
        flops=4 * B * H * L * L * D,           # QK^T and PV matmuls
        transcendentals=B * H * L * L,         # exp
        bytes_accessed=4 * B * H * L * D * itemsize + mask_bytes,
    )

    return pl.pallas_call(
        kernel,
        out_shape=jax.ShapeDtypeStruct((B, H, L, D), q.dtype),
        grid_spec=pltpu.PrefetchScalarGridSpec(
            num_scalar_prefetch=0,
            grid=(B, H),
            in_specs=in_specs,
            out_specs=blk,
        ),
        compiler_params=pltpu.CompilerParams(
            dimension_semantics=("parallel", "parallel")),
        cost_estimate=cost,
    )(*args)


# ----------------------------- full module ----------------------------------


def self_attention(x, params, num_heads, attention_mask=None,
                   key_padding_mask=None, *, compute_dtype=jnp.float32):
    """Forward pass matching torch SelfAttention.forward.

    x: [B, L, C]; params = (wq, bq, wk, bk, wv, bv, wo, bo), torch-layout
    weights [C, C]. attention_mask (optional): [B, 1, L, L], additive.
    key_padding_mask is accepted but unused (unused in the reference forward
    body as well). Returns (output, None)."""
    del key_padding_mask  # unused in the reference forward
    B, L, C = x.shape
    H = num_heads
    D = C // H
    if D * H != C:
        raise ValueError(f"embed_dim ({C}) not divisible by num_heads ({H})")
    if attention_mask is not None and attention_mask.shape != (B, 1, L, L):
        raise ValueError(f"expected attention mask shape {(B, 1, L, L)}, "
                         f"got {attention_mask.shape}")
    scaling = float(D) ** (-0.5)

    wq, bq, wk, bk, wv, bv, wo, bo = params

    # Intermediates carried in compute_dtype for the bf16 path (halves HBM traffic).
    inter_dtype = compute_dtype if compute_dtype != jnp.float32 else x.dtype

    x2d = x.reshape(B * L, C)
    q2d, k2d, v2d = _qkv_proj(x2d, (wq, wk, wv), (bq, bk, bv),
                              compute_dtype=compute_dtype, out_dtype=inter_dtype)

    def to_heads(t):  # [B*L, C] -> [B, H, L, D]  (wrapper-level layout plumbing)
        return t.reshape(B, L, H, D).transpose(0, 2, 1, 3)

    attn = _attention_core(to_heads(q2d), to_heads(k2d), to_heads(v2d),
                           scaling, attention_mask,
                           compute_dtype=compute_dtype)              # [B, H, L, D]

    attn2d = attn.transpose(0, 2, 1, 3).reshape(B * L, C)
    out2d = _linear(attn2d, wo, bo, compute_dtype=compute_dtype, out_dtype=x.dtype)
    return out2d.reshape(B, L, C), None


# ----------------------------- reference ------------------------------------


def reference(x, params, num_heads, attention_mask=None):
    B, L, C = x.shape
    H = num_heads
    D = C // H
    wq, bq, wk, bk, wv, bv, wo, bo = params
    q = (x @ wq.T + bq).reshape(B, L, H, D).transpose(0, 2, 1, 3)   # (B,H,L,D)
    k = (x @ wk.T + bk).reshape(B, L, H, D).transpose(0, 2, 3, 1)   # (B,H,D,L)
    v = (x @ wv.T + bv).reshape(B, L, H, D).transpose(0, 2, 1, 3)   # (B,H,L,D)
    w = (float(D) ** -0.5) * jnp.einsum("bhqd,bhdk->bhqk", q, k)
    if attention_mask is not None:
        w = w + attention_mask
    w = w - jnp.max(w, axis=-1, keepdims=True)
    w = jax.nn.softmax(w, axis=-1)
    out = jnp.einsum("bhqk,bhkd->bhqd", w, v)
    out = out.transpose(0, 2, 1, 3).reshape(B, L, C)
    return out @ wo.T + bo


# ----------------------------- test -----------------------------------------


if __name__ == "__main__":
    B, L = 2, 8
    embed_dim, num_heads = 32, 4

    key = jax.random.PRNGKey(0)
    keys = jax.random.split(key, 9)
    x = jax.random.normal(keys[0], (B, L, embed_dim), dtype=jnp.float32)

    def init_linear(kw, kb, out_f, in_f):
        w = jax.random.normal(kw, (out_f, in_f), dtype=jnp.float32) * 0.05
        b = 0.1 * jax.random.normal(kb, (out_f,), dtype=jnp.float32)
        return w, b

    wq, bq = init_linear(keys[1], keys[2], embed_dim, embed_dim)
    wk, bk = init_linear(keys[3], keys[4], embed_dim, embed_dim)
    wv, bv = init_linear(keys[5], keys[6], embed_dim, embed_dim)
    wo, bo = init_linear(keys[7], keys[8], embed_dim, embed_dim)
    params = (wq, bq, wk, bk, wv, bv, wo, bo)

    # Additive causal mask, torch-style shape (B, 1, L, L).
    causal = jnp.where(jnp.tril(jnp.ones((L, L), dtype=jnp.bool_)),
                       0.0, -1e9).astype(jnp.float32)
    attn_mask = jnp.broadcast_to(causal, (B, 1, L, L))

    # --- f32 path, no mask ---
    out, aux = self_attention(x, params, num_heads)
    out = jax.block_until_ready(out)
    ref = reference(x, params, num_heads)
    assert aux is None
    assert out.shape == (B, L, embed_dim), out.shape
    assert jnp.allclose(out, ref, atol=1e-4, rtol=1e-4), float(
        jnp.max(jnp.abs(out - ref)))

    # --- f32 path, with additive attention mask ---
    out_m, _ = self_attention(x, params, num_heads, attention_mask=attn_mask)
    out_m = jax.block_until_ready(out_m)
    ref_m = reference(x, params, num_heads, attention_mask=attn_mask)
    assert jnp.allclose(out_m, ref_m, atol=1e-4, rtol=1e-4), float(
        jnp.max(jnp.abs(out_m - ref_m)))

    # --- bf16-matmul path (f32 accumulation), looser tolerance ---
    out_bf, _ = self_attention(x, params, num_heads,
                               compute_dtype=jnp.bfloat16)
    out_bf = jax.block_until_ready(out_bf)
    assert jnp.allclose(out_bf, ref, atol=3e-2, rtol=3e-2), float(
        jnp.max(jnp.abs(out_bf - ref)))

    print("KERNEL_OK")
</pallas_src>

<mosaic_0001>
module attributes {stable_mosaic.version = 11 : i64} {
  func.func @_qkv_kernel(%arg0: i32, %arg1: memref<16x128xf32, #tpu.memory_space<vmem>>, %arg2: memref<128x384xf32, #tpu.memory_space<vmem>>, %arg3: memref<1x384xf32, #tpu.memory_space<vmem>>, %arg4: memref<16x128xf32, #tpu.memory_space<vmem>>, %arg5: memref<16x128xf32, #tpu.memory_space<vmem>>, %arg6: memref<16x128xf32, #tpu.memory_space<vmem>>) attributes {dimension_semantics = [#tpu.dimension_semantics<parallel>], iteration_bounds = array<i64: 1>, scalar_prefetch = 0 : i64, scratch_operands = 0 : i64, tpu.core_type = #tpu.core_type<tc>, window_params = [{transform_indices = @transform_0, window_bounds = array<i64: 16, 128>}, {pipeline_mode = #tpu.pipeline_mode<synchronous>, transform_indices = @transform_1, window_bounds = array<i64: 128, 384>}, {pipeline_mode = #tpu.pipeline_mode<synchronous>, transform_indices = @transform_2, window_bounds = array<i64: 1, 384>}, {transform_indices = @transform_3, window_bounds = array<i64: 16, 128>}, {transform_indices = @transform_4, window_bounds = array<i64: 16, 128>}, {transform_indices = @transform_5, window_bounds = array<i64: 16, 128>}]} {
    %c0 = arith.constant 0 : index
    %c0_0 = arith.constant 0 : index
    %0 = vector.load %arg1[%c0, %c0_0] : memref<16x128xf32, #tpu.memory_space<vmem>>, vector<16x128xf32>
    %c0_1 = arith.constant 0 : index
    %c0_2 = arith.constant 0 : index
    %1 = vector.load %arg2[%c0_1, %c0_2] : memref<128x384xf32, #tpu.memory_space<vmem>>, vector<128x384xf32>
    %cst = arith.constant dense<0.000000e+00> : vector<16x384xf32>
    %2 = tpu.matmul %0, %1, %cst {dimension_numbers = #tpu.dot_dimension_numbers<[1], [0], [0], [1], [0, 0, 1, 1], [], []>} : vector<16x128xf32>, vector<128x384xf32>, vector<16x384xf32> -> vector<16x384xf32>
    %c0_3 = arith.constant 0 : index
    %c0_4 = arith.constant 0 : index
    %3 = vector.load %arg3[%c0_3, %c0_4] : memref<1x384xf32, #tpu.memory_space<vmem>>, vector<1x384xf32>
    %4 = vector.broadcast %3 : vector<1x384xf32> to vector<16x384xf32>
    %5 = arith.addf %2, %4 : vector<16x384xf32>
    %6 = vector.extract_strided_slice %5 {offsets = [0, 0], sizes = [16, 128], strides = [1, 1]} : vector<16x384xf32> to vector<16x128xf32>
    %c0_5 = arith.constant 0 : index
    %c0_6 = arith.constant 0 : index
    %7 = vector.load %arg4[%c0_5, %c0_6] : memref<16x128xf32, #tpu.memory_space<vmem>>, vector<16x128xf32>
    tpu.vector_store %arg4[%c0_5, %c0_6], %6 {strides = array<i32>} : memref<16x128xf32, #tpu.memory_space<vmem>>, vector<16x128xf32>,
    %8 = vector.extract_strided_slice %5 {offsets = [0, 128], sizes = [16, 128], strides = [1, 1]} : vector<16x384xf32> to vector<16x128xf32>
    %c0_7 = arith.constant 0 : index
    %c0_8 = arith.constant 0 : index
    %9 = vector.load %arg5[%c0_7, %c0_8] : memref<16x128xf32, #tpu.memory_space<vmem>>, vector<16x128xf32>
    tpu.vector_store %arg5[%c0_7, %c0_8], %8 {strides = array<i32>} : memref<16x128xf32, #tpu.memory_space<vmem>>, vector<16x128xf32>,
    %10 = vector.extract_strided_slice %5 {offsets = [0, 256], sizes = [16, 128], strides = [1, 1]} : vector<16x384xf32> to vector<16x128xf32>
    %c0_9 = arith.constant 0 : index
    %c0_10 = arith.constant 0 : index
    %11 = vector.load %arg6[%c0_9, %c0_10] : memref<16x128xf32, #tpu.memory_space<vmem>>, vector<16x128xf32>
    tpu.vector_store %arg6[%c0_9, %c0_10], %10 {strides = array<i32>} : memref<16x128xf32, #tpu.memory_space<vmem>>, vector<16x128xf32>,
    return
  }
  func.func @transform_0(%arg0: i32) -> (i32, i32) {
    %c0_i32 = arith.constant 0 : i32
    %c0_i32_0 = arith.constant 0 : i32
    return %arg0, %c0_i32 : i32, i32
  }
  func.func @transform_1(%arg0: i32) -> (i32, i32) {
    %c0_i32 = arith.constant 0 : i32
    %c0_i32_0 = arith.constant 0 : i32
    %c0_i32_1 = arith.constant 0 : i32
    return %c0_i32, %c0_i32_0 : i32, i32
  }
  func.func @transform_2(%arg0: i32) -> (i32, i32) {
    %c0_i32 = arith.constant 0 : i32
    %c0_i32_0 = arith.constant 0 : i32
    %c0_i32_1 = arith.constant 0 : i32
    return %c0_i32, %c0_i32_0 : i32, i32
  }
  func.func @transform_3(%arg0: i32) -> (i32, i32) {
    %c0_i32 = arith.constant 0 : i32
    %c0_i32_0 = arith.constant 0 : i32
    return %arg0, %c0_i32 : i32, i32
  }
  func.func @transform_4(%arg0: i32) -> (i32, i32) {
    %c0_i32 = arith.constant 0 : i32
    %c0_i32_0 = arith.constant 0 : i32
    return %arg0, %c0_i32 : i32, i32
  }
  func.func @transform_5(%arg0: i32) -> (i32, i32) {
    %c0_i32 = arith.constant 0 : i32
    %c0_i32_0 = arith.constant 0 : i32
    return %arg0, %c0_i32 : i32, i32
  }
}

</mosaic_0001>

<bundles_post_ra>
// kernel: tpu_custom_call.1
= control target key start
LH: loop header
LB: loop body
LE: loop exit
PB: predicated region body
PF: predicated region fallthrough
CT: control target
= control target key end

     0   :  { %11 = vsyncpa [#allocation3], 0  ;;  %s697_s0 = inlined_call_operand.hbm [shape: f32[16,128], index: 0, kind: input, shape index: {}]   ;;  %s698_s1 = inlined_call_operand.hbm [shape: f32[128,384], index: 1, kind: input, shape index: {}]   ;;  %s699_s2 = inlined_call_operand.vmem [shape: f32[1,384], index: 2, kind: input, shape index: {}]   ;;  %s700_s3 = inlined_call_operand.hbm [shape: f32[16,128], index: 3, kind: output, shape index: {0}]   ;;  %s701_s4 = inlined_call_operand.hbm [shape: f32[16,128], index: 4, kind: output, shape index: {1}]   ;;  %s702_s5 = inlined_call_operand.hbm [shape: f32[16,128], index: 5, kind: output, shape index: {2}]  }
   0x1   :  { %12 = vsyncpa [#allocation6], 0 }
   0x2   :  { %13 = vsyncpa [#allocation4], 0 }
   0x3   :  { %14 = vsyncpa [#allocation9], 0  ;;  %s566_s18 = smov [#allocation2]   ;;  %s448_s22 = scalar_lea.hbm %s697_s0, 256 }
   0x4   :  { %s20_s19 = sshll.u32 %s566_s18, 4  ;;  %p449_p0 = scmp.ne.s32.totalorder %s697_s0, %s448_s22  ;;  %s21_s19 = int_to_ptr.vmem [resolvable:$true] %s20_s19 }
   0x5   :  { %p452_p1 = scmp.lt.u32.totalorder %s448_s22, %s697_s0 }
   0x7   :  { %p454_p2 = pnand %p452_p1, %p449_p0 }
   0x9   :  { %457 = shalt.err (!%p454_p2)
}
   0xa   :  { %s458_s27 = scalar_lea.vmem %s21_s19, 256  ;;  %p463_p4 = scmp.lt.s32.totalorder %s21_s19, %s21_s19 }
   0xb   :  { %p459_p3 = scmp.ne.s32.totalorder %s21_s19, %s458_s27  ;;  %p464_p5 = scmp.lt.s32.totalorder %s458_s27, %s458_s27 }
   0xd   :  { %p465_p6 = por %p464_p5, %p463_p4 }
   0xf   :  { %p466_p7 = pnand %p465_p6, %p459_p3 }
  0x11   :  { %469 = shalt.err (!%p466_p7)
}
  0x12   :  { %s567_s28 = smov 128   ;;  %s568_s29 = smov 8  }
  0x13   :  { %26 = dma.hbm_to_vmem [thread:$0]  %s697_s0, 256, %s21_s19, [#allocation3], %s567_s28, %s567_s28, %s568_s29  }
  0x14   :  { %s569_s7 = smov [#allocation5]   ;;  %s470_s11 = scalar_lea.hbm %s698_s1, 6144 }
  0x15   :  { %s32_s8 = sshll.u32 %s569_s7, 4  ;;  %p471_p8 = scmp.ne.s32.totalorder %s698_s1, %s470_s11  ;;  %s33_s8 = int_to_ptr.vmem [resolvable:$true] %s32_s8 }
  0x16   :  { %p474_p9 = scmp.lt.u32.totalorder %s470_s11, %s698_s1 }
  0x18   :  { %p476_p10 = pnand %p474_p9, %p471_p8 }
  0x1a   :  { %479 = shalt.err (!%p476_p10)
}
  0x1b   :  { %s480_s16 = scalar_lea.vmem %s33_s8, 6144  ;;  %p485_p12 = scmp.lt.s32.totalorder %s33_s8, %s33_s8 }
  0x1c   :  { %p481_p11 = scmp.ne.s32.totalorder %s33_s8, %s480_s16  ;;  %p486_p13 = scmp.lt.s32.totalorder %s480_s16, %s480_s16 }
  0x1e   :  { %p487_p0 = por %p486_p13, %p485_p12 }
  0x20   :  { %p488_p1 = pnand %p487_p0, %p481_p11 }
  0x22   :  { %491 = shalt.err (!%p488_p1)
}
  0x23   :  { %s570_s0 = smov 384   ;;  %s571_s17 = smov 24  }
  0x24   :  { %38 = dma.hbm_to_vmem [thread:$0]  %s698_s1, 6144, %s33_s8, [#allocation6], %s570_s0, %s570_s0, %s571_s17  }
  0x25   :  { %558 = dma.done.wait [#allocation3], 256  }
  0x26   :  { %559 = vsyncadd [#allocation3], 4294967040 }
  0x27   :  { %560 = dma.done.wait [#allocation6], 6144  }
  0x28   :  { %561 = vsyncadd [#allocation6], 4294961152  ;;  %v572_v0 = vmov 0.0   ;;  %v50_v1 = vld [vmem:[#allocation5 + $0x8] sm:$0xff]  ;;  %v53_v2 = vld [vmem:[#allocation5 + $0x20] sm:$0xff]  ;;  %s573_s21 = smov [#allocation7]  }
  0x29   :  { %178 = vmatprep.mubr.f32.mxu0 %v572_v0  ;;  %v49_v3 = vld [vmem:[#allocation5] sm:$0xff]  ;;  %v374_v4 = vpack.c.bf16 %v53_v2, %v50_v1  ;;  %v52_v5 = vld [vmem:[#allocation5 + $0x18] sm:$0xff]  ;;  %v59_v7 = vld [vmem:[#allocation5 + $0x50] sm:$0xff]  ;;  %s277_s22 = sshll.u32 %s573_s21, 4  ;;  %s574_s23 = smov [#allocation8]   ;;  %s278_s22 = int_to_ptr.vmem [resolvable:$true] %s277_s22 }
  0x2a   :  { %v56_v6 = vld [vmem:[#allocation5 + $0x38] sm:$0xff]  ;;  %v376_v8 = vpack.c.bf16 %v52_v5, %v49_v3  ;;  %v51_v10 = vld [vmem:[#allocation5 + $0x10] sm:$0xff]  ;;  %v54_v11 = vld [vmem:[#allocation5 + $0x28] sm:$0xff]  ;;  %s289_s24 = sshll.u32 %s574_s23, 4  ;;  %s492_s26 = scalar_lea.vmem %s278_s22, 256  ;;  %s638_s24 = int_to_ptr.vmem [resolvable:$true] %s289_s24 }
  0x2b   :  { %v378_v9 = vpack.c.bf16 %v59_v7, %v56_v6  ;;  %v55_v12 = vld [vmem:[#allocation5 + $0x30] sm:$0xff]  ;;  %375 = vmatprep.subr.bf16.mxu0 %v374_v4  ;;  %v406_v13 = vpack.c.bf16 %v54_v11, %v51_v10  ;;  %v58_v14 = vld [vmem:[#allocation5 + $0x48] sm:$0xff]  ;;  %v65_v16 = vld [vmem:[#allocation5 + $0x80] sm:$0xff]  ;;  %p493_p2 = scmp.ne.s32.totalorder %s278_s22, %s492_s26  ;;  %p497_p3 = scmp.lt.s32.totalorder %s278_s22, %s278_s22 }
  0x2c   :  { %v62_v15 = vld [vmem:[#allocation5 + $0x68] sm:$0xff]  ;;  %377 = vmatpush1.bf16.msra.mxu0 %v376_v8  ;;  %v380_v17 = vpack.c.bf16 %v58_v14, %v55_v12  ;;  %v57_v18 = vld [vmem:[#allocation5 + $0x40] sm:$0xff]  ;;  %v60_v19 = vld [vmem:[#allocation5 + $0x58] sm:$0xff]  ;;  %v99_v12 = vlaneseq  ;;  %p498_p4 = scmp.lt.s32.totalorder %s492_s26, %s492_s26 }
  0x2d   :  { %379 = vmatprep.subr.bf16.mxu0 %v378_v9  ;;  %407 = vmatprep.subr.bf16.mxu1 %v406_v13  ;;  %v382_v20 = vpack.c.bf16 %v65_v16, %v62_v15  ;;  %v410_v21 = vpack.c.bf16 %v60_v19, %v57_v18  ;;  %v61_v22 = vld [vmem:[#allocation5 + $0x60] sm:$0xff]  ;;  %v64_v23 = vld [vmem:[#allocation5 + $0x78] sm:$0xff]  ;;  %v71_v25 = vld [vmem:[#allocation5 + $0xb0] sm:$0xff] }
  0x2e   :  { %v68_v24 = vld [vmem:[#allocation5 + $0x98] sm:$0xff]  ;;  %409 = vmatpush3.bf16.msra.mxu1 %v406_v13  ;;  %v63_v26 = vld [vmem:[#allocation5 + $0x70] sm:$0xff]  ;;  %v66_v27 = vld [vmem:[#allocation5 + $0x88] sm:$0xff]  ;;  %v384_v29 = vpack.c.bf16 %v64_v23, %v61_v22  ;;  %v100_v13 = vshrl.u32 %v99_v12, 7  ;;  %p499_p5 = por %p498_p4, %p497_p3 }
  0x2f   :  { %411 = vmatprep.subr.bf16.mxu1 %v410_v21  ;;  %v414_v28 = vpack.c.bf16 %v66_v27, %v63_v26  ;;  %v69_v30 = vld [vmem:[#allocation5 + $0xa0] sm:$0xff]  ;;  %v72_v31 = vld [vmem:[#allocation5 + $0xb8] sm:$0xff]  ;;  %v386_v32 = vpack.c.bf16 %v71_v25, %v68_v24  ;;  %v67_v33 = vld [vmem:[#allocation5 + $0x90] sm:$0xff] }
  0x30   :  { %381 = vmatpush1.bf16.msra.mxu0 %v380_v17  ;;  %v70_v34 = vld [vmem:[#allocation5 + $0xa8] sm:$0xff]  ;;  %v77_v36 = vld [vmem:[#allocation5 + $0xe0] sm:$0xff]  ;;  %v418_v37 = vpack.c.bf16 %v72_v31, %v69_v30  ;;  %v75_v39 = vld [vmem:[#allocation5 + $0xd0] sm:$0xff]  ;;  %v101_v14 = vsub.s32 0, %v100_v13  ;;  %v105_v16 = vsub.s32 1, %v100_v13  ;;  %v109_v17 = vsub.s32 2, %v100_v13  ;;  %p500_p6 = pnand %p499_p5, %p493_p2 }
  0x31   :  { %383 = vmatprep.subr.bf16.mxu0 %v382_v20  ;;  %v74_v35 = vld [vmem:[#allocation5 + $0xc8] sm:$0xff]  ;;  %v388_v38 = vpack.c.bf16 %v70_v34, %v67_v33  ;;  %v73_v42 = vld [vmem:[#allocation5 + $0xc0] sm:$0xff]  ;;  %v76_v43 = vld [vmem:[#allocation5 + $0xd8] sm:$0xff] }
  0x32   :  { %413 = vmatpush3.bf16.msra.mxu1 %v410_v21  ;;  %v78_v40 = vld [vmem:[#allocation5 + $0xe8] sm:$0xff]  ;;  %v390_v41 = vpack.c.bf16 %v77_v36, %v74_v35  ;;  %v80_v44 = vld [vmem:[#allocation5 + $0xf8] sm:$0xff]  ;;  %v83_v45 = vld [vmem:[#allocation5 + $0x110] sm:$0xff]  ;;  %v392_v48 = vpack.c.bf16 %v76_v43, %v73_v42 }
  0x33   :  { %415 = vmatprep.subr.bf16.mxu1 %v414_v28  ;;  %v422_v46 = vpack.c.bf16 %v78_v40, %v75_v39  ;;  %v47_v47 = vld [vmem:[#allocation2] sm:$0xff]  ;;  %v81_v49 = vld [vmem:[#allocation5 + $0x100] sm:$0xff]  ;;  %v84_v50 = vld [vmem:[#allocation5 + $0x118] sm:$0xff]  ;;  %v394_v51 = vpack.c.bf16 %v83_v45, %v80_v44 }
  0x34   :  { %385 = vmatpush1.bf16.msra.mxu0 %v384_v29  ;;  %371 = vmatprep.mubr.f32.mxu1 %v47_v47  ;;  %v79_v52 = vld [vmem:[#allocation5 + $0xf0] sm:$0xff]  ;;  %v82_v53 = vld [vmem:[#allocation5 + $0x108] sm:$0xff]  ;;  %v89_v55 = vld [vmem:[#allocation5 + $0x140] sm:$0xff]  ;;  %v426_v56 = vpack.c.bf16 %v84_v50, %v81_v49 }
  0x35   :  { %387 = vmatprep.subr.bf16.mxu0 %v386_v32  ;;  %v86_v54 = vld [vmem:[#allocation5 + $0x128] sm:$0xff]  ;;  %v396_v57 = vpack.c.bf16 %v82_v53, %v79_v52  ;;  %v87_v58 = vld [vmem:[#allocation5 + $0x130] sm:$0xff]  ;;  %v85_v61 = vld [vmem:[#allocation5 + $0x120] sm:$0xff] }
  0x36   :  { %417 = vmatpush3.bf16.msra.mxu1 %v414_v28  ;;  %v90_v59 = vld [vmem:[#allocation5 + $0x148] sm:$0xff]  ;;  %v398_v60 = vpack.c.bf16 %v89_v55, %v86_v54  ;;  %v88_v62 = vld [vmem:[#allocation5 + $0x138] sm:$0xff]  ;;  %v95_v1 = vld [vmem:[#allocation5 + $0x170] sm:$0xff] }
  0x37   :  { %419 = vmatprep.subr.bf16.mxu1 %v418_v37  ;;  %v92_v63 = vld [vmem:[#allocation5 + $0x158] sm:$0xff]  ;;  %v430_v2 = vpack.c.bf16 %v90_v59, %v87_v58  ;;  %v400_v3 = vpack.c.bf16 %v88_v62, %v85_v61  ;;  %v93_v4 = vld [vmem:[#allocation5 + $0x160] sm:$0xff]  ;;  %v91_v7 = vld [vmem:[#allocation5 + $0x150] sm:$0xff] }
  0x38   :  { %389 = vmatpush1.bf16.msra.mxu0 %v388_v38  ;;  %v96_v5 = vld [vmem:[#allocation5 + $0x178] sm:$0xff]  ;;  %v402_v6 = vpack.c.bf16 %v95_v1, %v92_v63  ;;  %v94_v8 = vld [vmem:[#allocation5 + $0x168] sm:$0xff]  ;;  %v97_v15 = vld [vmem:[%s699_s2] sm:$0x7]  ;;  %s575_s2 = smov [#allocation10]  }
  0x39   :  { %391 = vmatprep.subr.bf16.mxu0 %v390_v41  ;;  %v434_v9 = vpack.c.bf16 %v96_v5, %v93_v4  ;;  %v404_v10 = vpack.c.bf16 %v94_v8, %v91_v7  ;;  %v48_v11 = vld [vmem:[#allocation2 + $0x8] sm:$0xff]  ;;  %v102_v18 = vrot.slane %v97_v15, %v101_v14  ;;  %v106_v19 = vrot.slane %v97_v15, %v105_v16  ;;  %s301_s25 = sshll.u32 %s575_s2, 4  ;;  %s640_s25 = int_to_ptr.vmem [resolvable:$true] %s301_s25 }
  0x3a   :  { %421 = vmatpush3.bf16.msra.mxu1 %v418_v37  ;;  %v110_v20 = vrot.slane %v97_v15, %v109_v17 }
  0x3b   :  { %423 = vmatprep.subr.bf16.mxu1 %v422_v46 }
  0x3c   :  { %393 = vmatpush1.bf16.msra.mxu0 %v392_v48 }
  0x3d   :  { %395 = vmatprep.subr.bf16.mxu0 %v394_v51 }
  0x3e   :  { %425 = vmatpush3.bf16.msra.mxu1 %v422_v46 }
  0x3f   :  { %427 = vmatprep.subr.bf16.mxu1 %v426_v56 }
  0x40   :  { %397 = vmatpush1.bf16.msra.mxu0 %v396_v57 }
  0x41   :  { %399 = vmatprep.subr.bf16.mxu0 %v398_v60 }
  0x42   :  { %429 = vmatpush3.bf16.msra.mxu1 %v426_v56 }
  0x43   :  { %431 = vmatprep.subr.bf16.mxu1 %v430_v2 }
  0x44   :  { %401 = vmatpush1.bf16.msra.mxu0 %v400_v3 }
  0x45   :  { %403 = vmatprep.subr.bf16.mxu0 %v402_v6 }
  0x46   :  { %433 = vmatpush3.bf16.msra.mxu1 %v430_v2 }
  0x47   :  { %435 = vmatprep.subr.bf16.mxu1 %v434_v9 }
  0x48   :  { %405 = vmatpush1.bf16.msra.mxu0 %v404_v10 }
  0x4a   :  { %437 = vmatpush3.bf16.msra.mxu1 %v434_v9 }
  0x4b   :  { %179 = vmatmul.mubr.f32.vlgmr.msra.gmra.mrb[0].mxu0 %v47_v47 }
  0x4c   :  { %184 = vmatprep.mubr.f32.mxu0 %v572_v0 }
  0x4d   :  { %372 = vmatmul.mubr.f32.vlgmr.msra.gmra.mrb[0].mxu1 %v48_v11 }
  0x4f   :  { %185 = vmatmul.mubr.f32.gmra.mrb[2].mxu0 %v48_v11 }
 0x11e   :  { %v180_v21 = vpop.f32.mrb[0].mxu0 }
 0x11f   :  { %v181_v22 = vadd.f32 %v180_v21, %v102_v18  ;;  %v182_v23 = vpop.f32.mrb[1].mxu0 }
 0x120   :  { %v183_v24 = vadd.f32 %v182_v23, %v106_v19  ;;  %v373_v25 = vpop.f32.mrb[0].mxu1 }
 0x121   :  { %266 = vst [vmem:[#allocation7] sm:$0xff] %v181_v22  ;;  %v263_v0 = vadd.f32 %v373_v25, %v110_v20  ;;  %v257_v26 = vpop.f32.mrb[1].mxu1 }
 0x122   :  { %268 = vst [vmem:[#allocation8] sm:$0xff] %v183_v24  ;;  %v186_v27 = vpop.f32.mrb[2].mxu0  ;;  %v258_v28 = vadd.f32 %v257_v26, %v110_v20 }
 0x123   :  { %v187_v29 = vadd.f32 %v186_v27, %v102_v18  ;;  %271 = vst [vmem:[#allocation10 + $0x8] sm:$0xff] %v263_v0  ;;  %v188_v30 = vpop.f32.mrb[3].mxu0 }
 0x124   :  { %v189_v31 = vadd.f32 %v188_v30, %v106_v19  ;;  %270 = vst [vmem:[#allocation10] sm:$0xff] %v258_v28 }
 0x125   :  { %267 = vst [vmem:[#allocation7 + $0x8] sm:$0xff] %v187_v29 }
 0x126   :  { %269 = vst [vmem:[#allocation8 + $0x8] sm:$0xff] %v189_v31 }
 0x127   :  { %503 = shalt.err (!%p500_p6)
}
 0x128   :  { %s504_s6 = scalar_lea.hbm %s700_s3, 256 }
 0x129   :  { %p505_p7 = scmp.ne.s32.totalorder %s700_s3, %s504_s6  ;;  %p508_p8 = scmp.lt.u32.totalorder %s504_s6, %s700_s3 }
 0x12b   :  { %p510_p9 = pnand %p508_p8, %p505_p7 }
 0x12d   :  { %513 = shalt.err (!%p510_p9)
}
 0x12e   :  { %283 = dma.vmem_to_hbm [thread:$0]  %s278_s22, 256, %s700_s3, [#allocation4], %s567_s28, %s567_s28, %s568_s29  }
 0x12f   :  { %s514_s13 = scalar_lea.vmem %s638_s24, 256  ;;  %p519_p11 = scmp.lt.s32.totalorder %s638_s24, %s638_s24 }
 0x130   :  { %p515_p10 = scmp.ne.s32.totalorder %s638_s24, %s514_s13  ;;  %p520_p12 = scmp.lt.s32.totalorder %s514_s13, %s514_s13 }
 0x132   :  { %p521_p13 = por %p520_p12, %p519_p11 }
 0x134   :  { %p522_p0 = pnand %p521_p13, %p515_p10 }
 0x136   :  { %525 = shalt.err (!%p522_p0)
}
 0x137   :  { %s526_s16 = scalar_lea.hbm %s701_s4, 256 }
 0x138   :  { %p527_p1 = scmp.ne.s32.totalorder %s701_s4, %s526_s16  ;;  %p530_p2 = scmp.lt.u32.totalorder %s526_s16, %s701_s4 }
 0x13a   :  { %p532_p3 = pnand %p530_p2, %p527_p1 }
 0x13c   :  { %535 = shalt.err (!%p532_p3)
}
 0x13d   :  { %295 = dma.vmem_to_hbm [thread:$0]  %s638_s24, 256, %s701_s4, [#allocation9], %s567_s28, %s567_s28, %s568_s29  }
 0x13e   :  { %s536_s20 = scalar_lea.vmem %s640_s25, 256  ;;  %p541_p5 = scmp.lt.s32.totalorder %s640_s25, %s640_s25 }
 0x13f   :  { %p537_p4 = scmp.ne.s32.totalorder %s640_s25, %s536_s20  ;;  %p542_p6 = scmp.lt.s32.totalorder %s536_s20, %s536_s20 }
 0x141   :  { %p543_p7 = por %p542_p6, %p541_p5 }
 0x143   :  { %p544_p8 = pnand %p543_p7, %p537_p4 }
 0x145   :  { %547 = shalt.err (!%p544_p8)
}
 0x146   :  { %s548_s23 = scalar_lea.hbm %s702_s5, 256 }
 0x147   :  { %p549_p9 = scmp.ne.s32.totalorder %s702_s5, %s548_s23  ;;  %p552_p10 = scmp.lt.u32.totalorder %s548_s23, %s702_s5 }
 0x149   :  { %p554_p11 = pnand %p552_p10, %p549_p9 }
 0x14b   :  { %557 = shalt.err (!%p554_p11)
}
 0x14c   :  { %307 = dma.vmem_to_hbm [thread:$0]  %s640_s25, 256, %s702_s5, [#allocation9], %s567_s28, %s567_s28, %s568_s29  }
 0x14d   :  { %562 = dma.done.wait [#allocation4], 256  }
 0x14e   :  { %563 = vsyncadd [#allocation4], 4294967040 }
 0x14f   :  { %564 = dma.done.wait [#allocation9], 512  }
 0x150   :  { %565 = vsyncadd [#allocation9], 4294966784 }
 0x151   :  { %317 = vsyncpa [#allocation3], 1 }
 0x152   :  { %318 = vsyncpa [#allocation6], 1 }
 0x153   :  { %319 = vsyncpa [#allocation4], 1 }
 0x154   :  { %320 = vsyncpa [#allocation9], 1 }

</bundles_post_ra>
